<compile_context>
chip_gen: v7x
topology: tpu7x:2x2x1
jax: 0.10.0
libtpu: 0.0.40
codegen_flags: <defaults>
</compile_context>

<pallas_src>
import functools

import jax
import jax.numpy as jnp
from jax.experimental import pallas as pl
from jax.experimental.pallas import tpu as pltpu


def _atan_f32(x):
    """Cephes-style single-precision atan built only from ops guaranteed to
    lower in Mosaic (abs, div, mul, add, where).  ~1e-7 accuracy."""
    ax = jnp.abs(x)
    sgn = jnp.where(x < 0.0, -1.0, 1.0)
    tan3pi8 = 2.414213562373095   # tan(3*pi/8)
    tanpi8 = 0.4142135623730951   # tan(pi/8)
    big = ax > tan3pi8
    med = ax > tanpi8
    xr = jnp.where(big, -1.0 / ax, jnp.where(med, (ax - 1.0) / (ax + 1.0), ax))
    off = jnp.where(big, jnp.pi / 2.0, jnp.where(med, jnp.pi / 4.0, 0.0))
    z = xr * xr
    p = (((8.05374449538e-2 * z - 1.38776856032e-1) * z + 1.99777106478e-1)
         * z - 3.33329491539e-1)
    return sgn * (off + xr + xr * z * p)


def _coupling_kernel(x_ref, w1_ref, b1_ref, w2_ref, b2_ref, z_ref, *,
                     c1, c2, log_scale):
    """One [C, tp] slab: fused s/t subnets + affine coupling epilogue."""
    x = x_ref[0]                                   # [C, tp]
    x1 = x[:c1, :]                                 # identity half (subnet input)
    x2 = x[c1:, :].astype(jnp.float32)             # transformed half

    cdt = w1_ref.dtype
    # Fused first layers of both subnets: [2H, C1] @ [C1, tp] -> [2H, tp]
    h = jnp.dot(w1_ref[...], x1.astype(cdt), preferred_element_type=jnp.float32)
    h = jnp.maximum(h + b1_ref[...], 0.0)

    # Fused (block-diagonal) second layers: [2C2, 2H] @ [2H, tp] -> [2C2, tp]
    st = jnp.dot(w2_ref[...], h.astype(cdt), preferred_element_type=jnp.float32)
    st = st + b2_ref[...]

    s = st[:c2, :]
    t = st[c2:, :]

    # e(s) = exp(clamp * 0.636 * atan(s))  (same 0.636 constant as the module)
    e = jnp.exp(log_scale * _atan_f32(s))
    y2 = e * x2 + t

    z_ref[0, :c1, :] = x[:c1, :]                   # x1 passes through untouched
    z_ref[0, c1:, :] = y2.astype(z_ref.dtype)


def _pick_pixel_tile(hw, max_tile):
    """Largest pixel tile that is a multiple of 128, divides hw, <= max_tile."""
    if hw <= max_tile or hw % 128 != 0:
        return hw                      # full-extent block is always legal
    tp = max_tile - (max_tile % 128)
    while tp > 128 and hw % tp != 0:
        tp -= 128
    return tp if hw % tp == 0 else hw


def affine_coupling_one_sided(x, params, clamp=5.0, max_pixel_tile=2048,
                              interpret=False):
    """Forward pass of FrEIA's AffineCouplingOneSided with 1x1-conv MLP subnets.

    x:      [N, C, H, W]
    params: {'s': {'w1':[HID,C1],'b1':[HID],'w2':[C2,HID],'b2':[C2]}, 't': {...}}
    Returns z = concat(x1, e(s)*x2 + t, channel axis), same shape/dtype as x.
    """
    n, c, hgt, wid = x.shape
    c1 = c // 2
    c2 = c - c1
    hw = hgt * wid

    hid = params['s']['w1'].shape[0]
    assert params['s']['w1'].shape == (hid, c1)
    assert params['s']['w2'].shape == (c2, hid)

    # Fuse the two subnets: stacked first layers, block-diagonal second layers.
    wdt = params['s']['w1'].dtype
    w1f = jnp.concatenate([params['s']['w1'], params['t']['w1']], axis=0)   # [2H, C1]
    w2f = jnp.zeros((2 * c2, 2 * hid), dtype=wdt)
    w2f = w2f.at[:c2, :hid].set(params['s']['w2'])
    w2f = w2f.at[c2:, hid:].set(params['t']['w2'])                          # [2C2, 2H]
    b1f = jnp.concatenate([params['s']['b1'], params['t']['b1']], axis=0)
    b2f = jnp.concatenate([params['s']['b2'], params['t']['b2']], axis=0)
    b1f = b1f.astype(jnp.float32).reshape(2 * hid, 1)
    b2f = b2f.astype(jnp.float32).reshape(2 * c2, 1)

    x3 = x.reshape(n, c, hw)          # pure reshape: NCHW is already [N, C, H*W]
    tp = _pick_pixel_tile(hw, max_pixel_tile)
    grid = (n, hw // tp)

    kernel = functools.partial(_coupling_kernel, c1=c1, c2=c2,
                               log_scale=float(clamp) * 0.636)

    resident = lambda i, j: (0, 0)    # weights/biases: DMA'd once, stay in VMEM

    z3 = pl.pallas_call(
        kernel,
        out_shape=jax.ShapeDtypeStruct((n, c, hw), x.dtype),
        grid=grid,
        in_specs=[
            pl.BlockSpec((1, c, tp), lambda i, j: (i, 0, j)),
            pl.BlockSpec(w1f.shape, resident),
            pl.BlockSpec(b1f.shape, resident),
            pl.BlockSpec(w2f.shape, resident),
            pl.BlockSpec(b2f.shape, resident),
        ],
        out_specs=pl.BlockSpec((1, c, tp), lambda i, j: (i, 0, j)),
        compiler_params=pltpu.CompilerParams(
            dimension_semantics=("parallel", "parallel")),
        interpret=interpret,
    )(x3, w1f, b1f, w2f, b2f)

    return z3.reshape(n, c, hgt, wid)


def _reference_forward(x, params, clamp=5.0):
    """Pure-jnp reference mirroring the PyTorch forward (rev=False, no cond)."""
    n, c, hgt, wid = x.shape
    c1 = c // 2
    x1 = x[:, :c1]
    x2 = x[:, c1:].astype(jnp.float32)

    def subnet(p):
        h = jnp.einsum('oc,ncxy->noxy', p['w1'].astype(jnp.float32),
                       x1.astype(jnp.float32))
        h = jnp.maximum(h + p['b1'].astype(jnp.float32)[None, :, None, None], 0.0)
        o = jnp.einsum('oc,ncxy->noxy', p['w2'].astype(jnp.float32), h)
        return o + p['b2'].astype(jnp.float32)[None, :, None, None]

    s = subnet(params['s'])
    t = subnet(params['t'])
    e = jnp.exp(clamp * 0.636 * jnp.arctan(s))
    y2 = e * x2 + t
    return jnp.concatenate([x1, y2.astype(x.dtype)], axis=1)


if __name__ == "__main__":
    key = jax.random.PRNGKey(0)
    N, C, H, W = 2, 4, 16, 16
    HID = 32
    C1, C2 = C // 2, C - C // 2

    keys = jax.random.split(key, 9)
    x = jax.random.normal(keys[0], (N, C, H, W), dtype=jnp.float32)
    params = {
        's': {'w1': 0.5 * jax.random.normal(keys[1], (HID, C1), jnp.float32),
              'b1': 0.1 * jax.random.normal(keys[2], (HID,), jnp.float32),
              'w2': 0.5 * jax.random.normal(keys[3], (C2, HID), jnp.float32),
              'b2': 0.1 * jax.random.normal(keys[4], (C2,), jnp.float32)},
        't': {'w1': 0.5 * jax.random.normal(keys[5], (HID, C1), jnp.float32),
              'b1': 0.1 * jax.random.normal(keys[6], (HID,), jnp.float32),
              'w2': 0.5 * jax.random.normal(keys[7], (C2, HID), jnp.float32),
              'b2': 0.1 * jax.random.normal(keys[8], (C2,), jnp.float32)},
    }

    z = jax.block_until_ready(affine_coupling_one_sided(x, params, clamp=5.0))
    z_ref = jax.block_until_ready(_reference_forward(x, params, clamp=5.0))

    assert z.shape == x.shape
    max_err = float(jnp.max(jnp.abs(z - z_ref)))
    assert jnp.allclose(z, z_ref, rtol=2e-3, atol=2e-3), f"max abs err = {max_err}"

    print("KERNEL_OK")
</pallas_src>

<mosaic_0001>
module attributes {stable_mosaic.version = 11 : i64} {
  func.func @_coupling_kernel(%arg0: i32, %arg1: i32, %arg2: memref<1x4x256xf32, #tpu.memory_space<vmem>>, %arg3: memref<64x2xf32, #tpu.memory_space<vmem>>, %arg4: memref<64x1xf32, #tpu.memory_space<vmem>>, %arg5: memref<4x64xf32, #tpu.memory_space<vmem>>, %arg6: memref<4x1xf32, #tpu.memory_space<vmem>>, %arg7: memref<1x4x256xf32, #tpu.memory_space<vmem>>) attributes {dimension_semantics = [#tpu.dimension_semantics<parallel>, #tpu.dimension_semantics<parallel>], iteration_bounds = array<i64: 2, 1>, scalar_prefetch = 0 : i64, scratch_operands = 0 : i64, tpu.core_type = #tpu.core_type<tc>, window_params = [{transform_indices = @transform_0, window_bounds = array<i64: 1, 4, 256>}, {pipeline_mode = #tpu.pipeline_mode<synchronous>, transform_indices = @transform_1, window_bounds = array<i64: 64, 2>}, {pipeline_mode = #tpu.pipeline_mode<synchronous>, transform_indices = @transform_2, window_bounds = array<i64: 64, 1>}, {pipeline_mode = #tpu.pipeline_mode<synchronous>, transform_indices = @transform_3, window_bounds = array<i64: 4, 64>}, {pipeline_mode = #tpu.pipeline_mode<synchronous>, transform_indices = @transform_4, window_bounds = array<i64: 4, 1>}, {transform_indices = @transform_5, window_bounds = array<i64: 1, 4, 256>}]} {
    %c0 = arith.constant 0 : index
    %c0_0 = arith.constant 0 : index
    %c0_1 = arith.constant 0 : index
    %0 = vector.load %arg2[%c0, %c0_0, %c0_1] : memref<1x4x256xf32, #tpu.memory_space<vmem>>, vector<1x4x256xf32>
    %1 = vector.shape_cast %0 : vector<1x4x256xf32> to vector<4x256xf32>
    %2 = vector.extract_strided_slice %1 {offsets = [0, 0], sizes = [2, 256], strides = [1, 1]} : vector<4x256xf32> to vector<2x256xf32>
    %3 = vector.extract_strided_slice %1 {offsets = [2, 0], sizes = [2, 256], strides = [1, 1]} : vector<4x256xf32> to vector<2x256xf32>
    %c0_2 = arith.constant 0 : index
    %c0_3 = arith.constant 0 : index
    %4 = vector.load %arg3[%c0_2, %c0_3] : memref<64x2xf32, #tpu.memory_space<vmem>>, vector<64x2xf32>
    %cst = arith.constant dense<0.000000e+00> : vector<64x256xf32>
    %5 = tpu.matmul %4, %2, %cst {dimension_numbers = #tpu.dot_dimension_numbers<[1], [0], [0], [1], [0, 0, 1, 1], [], []>} : vector<64x2xf32>, vector<2x256xf32>, vector<64x256xf32> -> vector<64x256xf32>
    %c0_4 = arith.constant 0 : index
    %c0_5 = arith.constant 0 : index
    %6 = vector.load %arg4[%c0_4, %c0_5] : memref<64x1xf32, #tpu.memory_space<vmem>>, vector<64x1xf32>
    %7 = vector.broadcast %6 : vector<64x1xf32> to vector<64x256xf32>
    %8 = arith.addf %5, %7 : vector<64x256xf32>
    %cst_6 = arith.constant 0.000000e+00 : f32
    %9 = vector.broadcast %cst_6 : f32 to vector<64x256xf32>
    %10 = arith.maximumf %8, %9 : vector<64x256xf32>
    %c0_7 = arith.constant 0 : index
    %c0_8 = arith.constant 0 : index
    %11 = vector.load %arg5[%c0_7, %c0_8] : memref<4x64xf32, #tpu.memory_space<vmem>>, vector<4x64xf32>
    %cst_9 = arith.constant dense<0.000000e+00> : vector<4x256xf32>
    %12 = tpu.matmul %11, %10, %cst_9 {dimension_numbers = #tpu.dot_dimension_numbers<[1], [0], [0], [1], [0, 0, 1, 1], [], []>} : vector<4x64xf32>, vector<64x256xf32>, vector<4x256xf32> -> vector<4x256xf32>
    %c0_10 = arith.constant 0 : index
    %c0_11 = arith.constant 0 : index
    %13 = vector.load %arg6[%c0_10, %c0_11] : memref<4x1xf32, #tpu.memory_space<vmem>>, vector<4x1xf32>
    %14 = vector.broadcast %13 : vector<4x1xf32> to vector<4x256xf32>
    %15 = arith.addf %12, %14 : vector<4x256xf32>
    %16 = vector.extract_strided_slice %15 {offsets = [0, 0], sizes = [2, 256], strides = [1, 1]} : vector<4x256xf32> to vector<2x256xf32>
    %17 = vector.extract_strided_slice %15 {offsets = [2, 0], sizes = [2, 256], strides = [1, 1]} : vector<4x256xf32> to vector<2x256xf32>
    %18 = math.absf %16 : vector<2x256xf32>
    %cst_12 = arith.constant 0.000000e+00 : f32
    %19 = vector.broadcast %cst_12 : f32 to vector<2x256xf32>
    %20 = arith.cmpf olt, %16, %19 : vector<2x256xf32>
    %cst_13 = arith.constant -1.000000e+00 : f32
    %cst_14 = arith.constant 1.000000e+00 : f32
    %21 = vector.broadcast %cst_13 : f32 to vector<2x256xf32>
    %22 = vector.broadcast %cst_14 : f32 to vector<2x256xf32>
    %23 = arith.select %20, %21, %22 : vector<2x256xi1>, vector<2x256xf32>
    %cst_15 = arith.constant 2.41421366 : f32
    %24 = vector.broadcast %cst_15 : f32 to vector<2x256xf32>
    %25 = arith.cmpf ogt, %18, %24 : vector<2x256xf32>
    %cst_16 = arith.constant 0.414213568 : f32
    %26 = vector.broadcast %cst_16 : f32 to vector<2x256xf32>
    %27 = arith.cmpf ogt, %18, %26 : vector<2x256xf32>
    %cst_17 = arith.constant -1.000000e+00 : f32
    %28 = vector.broadcast %cst_17 : f32 to vector<2x256xf32>
    %29 = arith.divf %28, %18 : vector<2x256xf32>
    %cst_18 = arith.constant 1.000000e+00 : f32
    %30 = vector.broadcast %cst_18 : f32 to vector<2x256xf32>
    %31 = arith.subf %18, %30 : vector<2x256xf32>
    %cst_19 = arith.constant 1.000000e+00 : f32
    %32 = vector.broadcast %cst_19 : f32 to vector<2x256xf32>
    %33 = arith.addf %18, %32 : vector<2x256xf32>
    %34 = arith.divf %31, %33 : vector<2x256xf32>
    %35 = arith.select %27, %34, %18 : vector<2x256xi1>, vector<2x256xf32>
    %36 = arith.select %25, %29, %35 : vector<2x256xi1>, vector<2x256xf32>
    %cst_20 = arith.constant 0.785398185 : f32
    %cst_21 = arith.constant 0.000000e+00 : f32
    %37 = vector.broadcast %cst_20 : f32 to vector<2x256xf32>
    %38 = vector.broadcast %cst_21 : f32 to vector<2x256xf32>
    %39 = arith.select %27, %37, %38 : vector<2x256xi1>, vector<2x256xf32>
    %cst_22 = arith.constant 1.57079637 : f32
    %40 = vector.broadcast %cst_22 : f32 to vector<2x256xf32>
    %41 = arith.select %25, %40, %39 : vector<2x256xi1>, vector<2x256xf32>
    %42 = arith.mulf %36, %36 : vector<2x256xf32>
    %cst_23 = arith.constant 0.0805374458 : f32
    %43 = vector.broadcast %cst_23 : f32 to vector<2x256xf32>
    %44 = arith.mulf %43, %42 : vector<2x256xf32>
    %cst_24 = arith.constant 0.138776854 : f32
    %45 = vector.broadcast %cst_24 : f32 to vector<2x256xf32>
    %46 = arith.subf %44, %45 : vector<2x256xf32>
    %47 = arith.mulf %46, %42 : vector<2x256xf32>
    %cst_25 = arith.constant 0.199777111 : f32
    %48 = vector.broadcast %cst_25 : f32 to vector<2x256xf32>
    %49 = arith.addf %47, %48 : vector<2x256xf32>
    %50 = arith.mulf %49, %42 : vector<2x256xf32>
    %cst_26 = arith.constant 0.333329499 : f32
    %51 = vector.broadcast %cst_26 : f32 to vector<2x256xf32>
    %52 = arith.subf %50, %51 : vector<2x256xf32>
    %53 = arith.addf %41, %36 : vector<2x256xf32>
    %54 = arith.mulf %36, %42 : vector<2x256xf32>
    %55 = arith.mulf %54, %52 : vector<2x256xf32>
    %56 = arith.addf %53, %55 : vector<2x256xf32>
    %57 = arith.mulf %23, %56 : vector<2x256xf32>
    %cst_27 = arith.constant 3.180000e+00 : f32
    %58 = vector.broadcast %cst_27 : f32 to vector<2x256xf32>
    %59 = arith.mulf %58, %57 : vector<2x256xf32>
    %60 = math.exp %59 : vector<2x256xf32>
    %61 = arith.mulf %60, %3 : vector<2x256xf32>
    %62 = arith.addf %61, %17 : vector<2x256xf32>
    %63 = vector.extract_strided_slice %1 {offsets = [0, 0], sizes = [2, 256], strides = [1, 1]} : vector<4x256xf32> to vector<2x256xf32>
    %c0_28 = arith.constant 0 : index
    %c0_29 = arith.constant 0 : index
    %c0_30 = arith.constant 0 : index
    %64 = vector.load %arg7[%c0_28, %c0_29, %c0_30] : memref<1x4x256xf32, #tpu.memory_space<vmem>>, vector<1x2x256xf32>
    %65 = vector.shape_cast %64 : vector<1x2x256xf32> to vector<2x256xf32>
    %66 = vector.shape_cast %63 : vector<2x256xf32> to vector<1x2x256xf32>
    tpu.vector_store %arg7[%c0_28, %c0_29, %c0_30], %66 {strides = array<i32>} : memref<1x4x256xf32, #tpu.memory_space<vmem>>, vector<1x2x256xf32>,
    %c0_31 = arith.constant 0 : index
    %c2 = arith.constant 2 : index
    %c0_32 = arith.constant 0 : index
    %67 = vector.load %arg7[%c0_31, %c2, %c0_32] : memref<1x4x256xf32, #tpu.memory_space<vmem>>, vector<1x2x256xf32>
    %68 = vector.shape_cast %67 : vector<1x2x256xf32> to vector<2x256xf32>
    %69 = vector.shape_cast %62 : vector<2x256xf32> to vector<1x2x256xf32>
    tpu.vector_store %arg7[%c0_31, %c2, %c0_32], %69 {strides = array<i32>} : memref<1x4x256xf32, #tpu.memory_space<vmem>>, vector<1x2x256xf32>,
    return
  }
  func.func @transform_0(%arg0: i32, %arg1: i32) -> (i32, i32, i32) {
    %c0_i32 = arith.constant 0 : i32
    %c0_i32_0 = arith.constant 0 : i32
    return %arg0, %c0_i32, %arg1 : i32, i32, i32
  }
  func.func @transform_1(%arg0: i32, %arg1: i32) -> (i32, i32) {
    %c0_i32 = arith.constant 0 : i32
    %c0_i32_0 = arith.constant 0 : i32
    %c0_i32_1 = arith.constant 0 : i32
    return %c0_i32, %c0_i32_0 : i32, i32
  }
  func.func @transform_2(%arg0: i32, %arg1: i32) -> (i32, i32) {
    %c0_i32 = arith.constant 0 : i32
    %c0_i32_0 = arith.constant 0 : i32
    %c0_i32_1 = arith.constant 0 : i32
    return %c0_i32, %c0_i32_0 : i32, i32
  }
  func.func @transform_3(%arg0: i32, %arg1: i32) -> (i32, i32) {
    %c0_i32 = arith.constant 0 : i32
    %c0_i32_0 = arith.constant 0 : i32
    %c0_i32_1 = arith.constant 0 : i32
    return %c0_i32, %c0_i32_0 : i32, i32
  }
  func.func @transform_4(%arg0: i32, %arg1: i32) -> (i32, i32) {
    %c0_i32 = arith.constant 0 : i32
    %c0_i32_0 = arith.constant 0 : i32
    %c0_i32_1 = arith.constant 0 : i32
    return %c0_i32, %c0_i32_0 : i32, i32
  }
  func.func @transform_5(%arg0: i32, %arg1: i32) -> (i32, i32, i32) {
    %c0_i32 = arith.constant 0 : i32
    %c0_i32_0 = arith.constant 0 : i32
    return %arg0, %c0_i32, %arg1 : i32, i32, i32
  }
}

</mosaic_0001>

<bundles_post_ra>
// kernel: tpu_custom_call.1
= control target key start
LH: loop header
LB: loop body
LE: loop exit
PB: predicated region body
PF: predicated region fallthrough
CT: control target
= control target key end

     0   :  { %10 = vsyncpa [#allocation3], 0  ;;  %s1186_s0 = inlined_call_operand.vmem [shape: f32[2,4,256], index: 0, kind: input, shape index: {}]   ;;  %s1187_s1 = inlined_call_operand.vmem [shape: f32[64,2], index: 1, kind: input, shape index: {}]   ;;  %s1188_s2 = inlined_call_operand.vmem [shape: f32[64,1], index: 2, kind: input, shape index: {}]   ;;  %s1189_s3 = inlined_call_operand.vmem [shape: f32[4,64], index: 3, kind: input, shape index: {}]   ;;  %s1190_s4 = inlined_call_operand.vmem [shape: f32[4,1], index: 4, kind: input, shape index: {}]   ;;  %s1191_s5 = inlined_call_operand.hbm [shape: f32[2,4,256], index: 5, kind: output, shape index: {}]  }
   0x1   :  { %12 = vsyncpa [#allocation3 + $0x1], 0  ;;  %s963_s18 = smov 0   ;;  %s965_s19 = smov 0  }
   0x2   :  { %s967_s20 = smov 0   ;;  %s969_s21 = smov 0  }
   0x3   :  { %s971_s22 = smov 0   ;;  %s973_s23 = smov 0  }
   0x4 LB: > { %s728_s24 = sadd.s32 4294967295, %s927_s23   ;;  %s729_s25 = sadd.s32 4294967294, %s927_s23   ;;  %s927_s23 = sphi %s973_s23, %s18_s23   ;;  %s923_s22 = sphi %s971_s22, %s1198_s22   ;;  %s919_s21 = sphi %s969_s21, %s1197_s21   ;;  %s915_s20 = sphi %s967_s20, %s1196_s20   ;;  %s911_s19 = sphi %s965_s19, %s1195_s19   ;;  %s907_s18 = sphi %s963_s18, %s1194_s18  }
   0x5   : > { %s30_s26 = sadd.s32 1, %s923_s22  ;;  %s151_s27 = sadd.s32 1, %s915_s20 }
   0x6   : > { %p32_p0 = scmp.ge.s32.totalorder %s30_s26, 2  ;;  %p161_p1 = scmp.ne.s32.totalorder %s915_s20, %s911_s19 }
   0x7   : > { %p162_p2 = scmp.eq.s32.totalorder %s728_s24, 1  ;;  %p167_p3 = scmp.ne.s32.totalorder %s911_s19, %s907_s18 }
   0x8   : > { %s1200_s26 = smov (%p32_p0, %s30_s26), 0  ;;  %p168_p5 = scmp.eq.s32.totalorder %s729_s25, 1 }
   0x9   : > { %p1003_p4 = por %p162_p2, %p161_p1  ;;  %s146_s29 = ssub.s32 %s923_s22, %s1200_s26 }
   0xa   : > { %p732_p6 = scmp.ge.s32.totalorder %s927_s23, 1  ;;  %p149_p7 = scmp.eq.s32.totalorder %s146_s29, 0 }
   0xb   : > { %p1010_p8 = por %p168_p5, %p167_p3  ;;  %p211_p9 = scmp.lt.s32.totalorder %s927_s23, 3 }
   0xc   : > { %s1016_s6 = scalar_select %p149_p7, %s915_s20, %s151_s27  }
   0xd   : > { %p212_p10 = pnand %p732_p6, %p211_p9 }
   0xe   : > { %p244_p11 = scmp.lt.s32.totalorder (!%p212_p10), %s919_s21, 1  ;;  %v929_v0 = vmov (!%p212_p10), 0.0   ;;  %v930_v1 = vmov (!%p212_p10), 0   ;;  %v263_v2 = vld [vmem:[%s1188_s2] sm:$0xff] (!%p212_p10)  ;;  %v265_v3 = vld [vmem:[%s1188_s2 + $0x10] sm:$0xff] (!%p212_p10)  ;;  %v264_v4 = vld [vmem:[%s1188_s2 + $0x8] sm:$0xff] (!%p212_p10) }
   0xf   : > { %215 = sbr.rel (%p212_p10) target bundleno = 574 (0x23e), region = 40  ;;  %407 = vmatprep.mubr.f32.mxu0 (!%p212_p10), %v929_v0  ;;  %547 = vmatprep.mubr.f32.mxu1 (!%p212_p10), %v929_v0  ;;  %v266_v5 = vld [vmem:[%s1188_s2 + $0x18] sm:$0xff] (!%p212_p10)  ;;  %vm338_vm0 = vcmask (!%p212_p10), 1041408   ;;  %v255_v8 = vld [vmem:[%s1187_s1] sm:$0xff] (!%p212_p10)  ;;  %vm313_vm1 = vcmask (!%p212_p10), 15360   ;;  %v268_v10 = vld [vmem:[%s1188_s2 + $0x28] sm:$0xff] (!%p212_p10) }
  0x10   : > { %834 = vset.pattern.permute.xlu0 (!%p212_p10), %v930_v1  ;;  %835 = vset.pattern.permute.xlu1 (!%p212_p10), %v930_v1  ;;  %v267_v9 = vld [vmem:[%s1188_s2 + $0x20] sm:$0xff] (!%p212_p10)  ;;  %v256_v11 = vld [vmem:[%s1187_s1 + $0x8] sm:$0xff] (!%p212_p10)  ;;  %v269_v12 = vld [vmem:[%s1188_s2 + $0x30] sm:$0xff] (!%p212_p10)  ;;  %vm479_vm2 = vcmask (!%p212_p10), 523264   ;;  %s240_s24 = sand.u32 (!%p212_p10), 1, %s911_s19   ;;  %s759_s29 = sshll.u32 (!%p212_p10), %s919_s21, 7 }
  0x11   : > { %273 = vperm.xlu0 (!%p212_p10), %834, %v263_v2   ;;  %283 = vperm.xlu1 (!%p212_p10), %835, %v265_v3   ;;  %v270_v13 = vld [vmem:[%s1188_s2 + $0x38] sm:$0xff] (!%p212_p10)  ;;  %v257_v14 = vld [vmem:[%s1187_s1 + $0x10] sm:$0xff] (!%p212_p10)  ;;  %v473_v15 = vld [vmem:[%s1190_s4] sm:$0xf] (!%p212_p10)  ;;  %s733_s25 = sshll.u32 (!%p212_p10), %s240_s24, 3  ;;  %s1136_s10 = scalar_lea.hbm (!%p212_p10), %s1191_s5, %s759_s29 }
  0x12   : > { %v258_v16 = vld [vmem:[%s1187_s1 + $0x18] sm:$0xff] (!%p212_p10)  ;;  %v259_v17 = vld [vmem:[%s1187_s1 + $0x20] sm:$0xff] (!%p212_p10)  ;;  %v260_v18 = vld [vmem:[%s1187_s1 + $0x28] sm:$0xff] (!%p212_p10)  ;;  %s1105_s27 = scalar_lea.vmem (!%p212_p10), [#allocation2], %s733_s25  ;;  %s636_s11 = scalar_lea.sflag (!%p212_p10), [#allocation3], %s240_s24 }
  0x13   : > { %v261_v19 = vld [vmem:[%s1187_s1 + $0x30] sm:$0xff] (!%p212_p10)  ;;  %v262_v20 = vld [vmem:[%s1187_s1 + $0x38] sm:$0xff] (!%p212_p10) }
  0x15   : > { %278 = vperm.xlu0 (!%p212_p10), %834, %v264_v4   ;;  %288 = vperm.xlu1 (!%p212_p10), %835, %v266_v5  }
  0x16   : > { %s245_s7 = scalar_select %p244_p11, %s919_s21, 1 }
  0x17   : > { %s932_s21 = smov [#allocation2]  }
  0x18   : > { %s758_s12 = sshll.u32 %s245_s7, 3  ;;  %s652_s7 = sshll.u32 %s1105_s27, 4  ;;  %s1138_s7 = int_to_ptr.vmem [resolvable:$true] %s652_s7 }
  0x19   : > { %s251_s15 = scalar_lea.vmem %s1186_s0, %s758_s12  ;;  %293 = vperm.xlu0 %834, %v267_v9   ;;  %298 = vperm.xlu1 %835, %v268_v10   ;;  %s849_s12 = scalar_lea.vmem %s1138_s7, 128 }
  0x1a   : > { %v1037_v6 = vld [vmem:[%s251_s15] sm:$0xff]  ;;  %p850_p12 = scmp.ne.s32.totalorder %s1138_s7, %s849_s12  ;;  %s853_s13 = sshll.u32 %s932_s21, 4  ;;  %s854_s13 = int_to_ptr.vmem [resolvable:$false] %s853_s13 }
  0x1b   : > { %v1041_v7 = vcombine.high %v1037_v6, %v1037_v6  ;;  %628 = vst [vmem:[%s1105_s27] sm:$0x33] %v1037_v6  ;;  %s855_s14 = scalar_lea.vmem %s854_s13, 256  ;;  %p856_p1 = scmp.lt.s32.totalorder %s1138_s7, %s854_s13 }
  0x1c   : > { %p851_p13 = pnand %p850_p12, %p1003_p4  ;;  %p857_p2 = scmp.lt.s32.totalorder %s855_s14, %s849_s12 }
  0x1d   : > { %736 = vmatprep.subr.msk.mxu0 %vm338_vm0, %v1041_v7  ;;  %303 = vperm.xlu0 %834, %v269_v12  }
  0x1e   : > { %737 = vmatpush1.msk.msra.mxu0 %vm338_vm0, %v1037_v6  ;;  %308 = vperm.xlu1 %835, %v270_v13   ;;  %p852_p0 = pneg %p851_p13  ;;  %p858_p3 = por %p857_p2, %p856_p1 }
  0x1f   : > { %738 = vmatmul.mubr.msk.f32.vlgmr.msra.gmra.mrb[0].mxu0 %vm313_vm1, %v255_v8 }
  0x20   : > { %413 = vmatprep.mubr.f32.mxu0 %v929_v0  ;;  %p859_p5 = pnand %p858_p3, %p852_p0 }
  0x21   : > { %476 = vperm.xlu0 %834, %v473_v15  }
  0x23   : > { %739 = vmatmul.mubr.msk.f32.gmra.mrb[2].mxu0 %vm313_vm1, %v256_v11 }
  0x24   : > { %419 = vmatprep.mubr.f32.mxu0 %v929_v0 }
  0x27   : > { %740 = vmatmul.mubr.msk.f32.gmra.mrb[4].mxu0 %vm313_vm1, %v257_v14 }
  0x28   : > { %425 = vmatprep.mubr.f32.mxu0 %v929_v0 }
  0x2b   : > { %741 = vmatmul.mubr.msk.f32.gmra.mrb[6].mxu0 %vm313_vm1, %v258_v16 }
  0x2c   : > { %431 = vmatprep.mubr.f32.mxu0 %v929_v0 }
  0x2f   : > { %742 = vmatmul.mubr.msk.f32.gmra.mrb[8].mxu0 %vm313_vm1, %v259_v17 }
  0x30   : > { %437 = vmatprep.mubr.f32.mxu0 %v929_v0 }
  0x33   : > { %743 = vmatmul.mubr.msk.f32.gmra.mrb[10].mxu0 %vm313_vm1, %v260_v18 }
  0x34   : > { %443 = vmatprep.mubr.f32.mxu0 %v929_v0 }
  0x37   : > { %744 = vmatmul.mubr.msk.f32.gmra.mrb[12].mxu0 %vm313_vm1, %v261_v19 }
  0x38   : > { %449 = vmatprep.mubr.f32.mxu0 %v929_v0 }
  0x3b   : > { %745 = vmatmul.mubr.msk.f32.gmra.mrb[14].mxu0 %vm313_vm1, %v262_v20 }
  0x90   : > { %v274_v21 = vpop.permute.xlu0 %273  ;;  %v284_v30 = vpop.permute.xlu1 %283 }
  0x94   : > { %v279_v25 = vpop.permute.xlu0 %278  ;;  %v289_v41 = vpop.permute.xlu1 %288 }
  0x98   : > { %v294_v54 = vpop.permute.xlu0 %293  ;;  %v299_v57 = vpop.permute.xlu1 %298 }
  0x9c   : > { %v304_v9 = vpop.permute.xlu0 %303 }
  0x9d   : > { %v309_v12 = vpop.permute.xlu1 %308 }
  0xf2   : > { %v409_v22 = vpop.f32.mrb[0].mxu0 }
  0xf3   : > { %v411_v23 = vpop.f32.mrb[1].mxu0  ;;  %v410_v24 = vadd.f32 %v409_v22, %v274_v21 }
  0xf4   : > { %v412_v26 = vadd.f32 %v411_v23, %v274_v21 }
  0xf5   : > { %v456_v32 = vmax.f32 %v410_v24, 0.0  ;;  %v472_v24 = vld [vmem:[%s1189_s3] sm:$0xf] }
  0xf6   : > { %v415_v27 = vpop.f32.mrb[2].mxu0  ;;  %v457_v34 = vmax.f32 %v412_v26, 0.0 }
  0xf7   : > { %v416_v28 = vadd.f32 %v415_v27, %v279_v25  ;;  %v417_v29 = vpop.f32.mrb[3].mxu0 }
  0xf8   : > { %v418_v31 = vadd.f32 %v417_v29, %v279_v25  ;;  %v477_v25 = vpop.permute.xlu0 %476 }
  0xf9   : > { %v458_v33 = vmax.f32 %v416_v28, 0.0 }
  0xfa   : > { %v459_v35 = vmax.f32 %v418_v31, 0.0  ;;  %v421_v36 = vpop.f32.mrb[4].mxu0 }
  0xfb   : > { %v423_v37 = vpop.f32.mrb[5].mxu0  ;;  %v762_v38 = vpack.c.bf16 %v458_v33, %v456_v32  ;;  %v422_v40 = vadd.f32 %v421_v36, %v284_v30 }
  0xfc   : > { %v760_v39 = vpack.c.bf16 %v459_v35, %v457_v34  ;;  %v424_v42 = vadd.f32 %v423_v37, %v284_v30 }
  0xfd   : > { %v460_v47 = vmax.f32 %v422_v40, 0.0 }
  0xfe   : > { %v427_v43 = vpop.f32.mrb[6].mxu0  ;;  %761 = vmatprep.subr.bf16.mxu1 %v760_v39  ;;  %v461_v49 = vmax.f32 %v424_v42, 0.0 }
  0xff   : > { %v428_v44 = vadd.f32 %v427_v43, %v289_v41  ;;  %v429_v45 = vpop.f32.mrb[7].mxu0  ;;  %763 = vmatpush1.bf16.msra.mxu1 %v762_v38 }
 0x100   : > { %v430_v46 = vadd.f32 %v429_v45, %v289_v41 }
 0x101   : > { %v462_v48 = vmax.f32 %v428_v44, 0.0 }
 0x102   : > { %v463_v50 = vmax.f32 %v430_v46, 0.0  ;;  %v433_v51 = vpop.f32.mrb[8].mxu0 }
 0x103   : > { %v766_v52 = vpack.c.bf16 %v462_v48, %v460_v47  ;;  %v435_v53 = vpop.f32.mrb[9].mxu0  ;;  %v434_v56 = vadd.f32 %v433_v51, %v294_v54 }
 0x104   : > { %v764_v55 = vpack.c.bf16 %v463_v50, %v461_v49  ;;  %v436_v58 = vadd.f32 %v435_v53, %v294_v54 }
 0x105   : > { %v464_v63 = vmax.f32 %v434_v56, 0.0 }
 0x106   : > { %v439_v59 = vpop.f32.mrb[10].mxu0  ;;  %765 = vmatprep.subr.bf16.mxu1 %v764_v55  ;;  %v465_v2 = vmax.f32 %v436_v58, 0.0 }
 0x107   : > { %v440_v60 = vadd.f32 %v439_v59, %v299_v57  ;;  %v441_v61 = vpop.f32.mrb[11].mxu0  ;;  %767 = vmatpush1.bf16.msra.mxu1 %v766_v52 }
 0x108   : > { %v442_v62 = vadd.f32 %v441_v61, %v299_v57 }
 0x109   : > { %v466_v1 = vmax.f32 %v440_v60, 0.0 }
 0x10a   : > { %v467_v3 = vmax.f32 %v442_v62, 0.0  ;;  %v445_v4 = vpop.f32.mrb[12].mxu0 }
 0x10b   : > { %v770_v5 = vpack.c.bf16 %v466_v1, %v464_v63  ;;  %v447_v8 = vpop.f32.mrb[13].mxu0  ;;  %v446_v11 = vadd.f32 %v445_v4, %v304_v9 }
 0x10c   : > { %v768_v10 = vpack.c.bf16 %v467_v3, %v465_v2  ;;  %v448_v13 = vadd.f32 %v447_v8, %v304_v9 }
 0x10d   : > { %v468_v18 = vmax.f32 %v446_v11, 0.0 }
 0x10e   : > { %v451_v14 = vpop.f32.mrb[14].mxu0  ;;  %769 = vmatprep.subr.bf16.mxu1 %v768_v10  ;;  %v469_v20 = vmax.f32 %v448_v13, 0.0 }
 0x10f   : > { %v452_v15 = vadd.f32 %v451_v14, %v309_v12  ;;  %v453_v16 = vpop.f32.mrb[15].mxu0  ;;  %771 = vmatpush1.bf16.msra.mxu1 %v770_v5 }
 0x110   : > { %v454_v17 = vadd.f32 %v453_v16, %v309_v12  ;;  %v931_v12 = vmov 1.0  }
 0x111   : > { %v470_v19 = vmax.f32 %v452_v15, 0.0 }
 0x112   : > { %v471_v21 = vmax.f32 %v454_v17, 0.0 }
 0x113   : > { %v774_v22 = vpack.c.bf16 %v470_v19, %v468_v18 }
 0x114   : > { %v772_v23 = vpack.c.bf16 %v471_v21, %v469_v20  ;;  %v614_v21 = vrot.slane %v1037_v6, 2 }
 0x116   : > { %773 = vmatprep.subr.bf16.mxu1 %v772_v23 }
 0x117   : > { %775 = vmatpush1.bf16.msra.mxu1 %v774_v22  ;;  %v615_v22 = vrot.slane %v1041_v7, 2 }
 0x11a   : > { %746 = vmatmul.mubr.msk.f32.vlgmr.msra.gmra.mrb[0].mxu1 %vm479_vm2, %v472_v24 }
 0x1ed   : > { %v549_v26 = vpop.f32.mrb[0].mxu1 }
 0x1ee   : > { %v1109_v27 = vadd.f32 %v549_v26, %v477_v25  ;;  %v551_v28 = vpop.f32.mrb[1].mxu1 }
 0x1ef   : > { %v1111_v29 = vadd.f32 %v551_v28, %v477_v25 }
 0x1f0   : > { %v554_v30 = vand.u32 2147483647, %v1109_v27  ;;  %vm556_vm7 = vcmp.lt.f32.partialorder %v1109_v27, 0.0  ;;  %v622_v25 = vrot.slane %v1109_v27, 2 }
 0x1f1   : > { %v555_v31 = vand.u32 2147483647, %v1111_v29  ;;  %vm557_vm8 = vcmp.lt.f32.partialorder %v1111_v29, 0.0  ;;  %v558_v13 = vsel %vm556_vm7, -1.0, %v931_v12 }
 0x1f2   : > { %v570_v32 = vadd.f32 1.0, %v554_v30  ;;  %837 = vrcp.f32 %v554_v30  ;;  %v747_v35 = vadd.f32 -1.0, %v554_v30  ;;  %vm562_vm3 = vcmp.gt.f32.partialorder %v554_v30, 0.41421357 }
 0x1f3   : > { %v571_v33 = vadd.f32 1.0, %v555_v31  ;;  %v748_v39 = vadd.f32 -1.0, %v555_v31  ;;  %vm560_vm4 = vcmp.gt.f32.partialorder %v554_v30, 2.4142137  ;;  %vm563_vm5 = vcmp.gt.f32.partialorder %v555_v31, 0.41421357 }
 0x1f4   : > { %839 = vrcp.f32 %v570_v32  ;;  %vm561_vm6 = vcmp.gt.f32.partialorder %v555_v31, 2.4142137  ;;  %v580_v57 = vsel %vm562_vm3, 0.7853982, %v929_v0  ;;  %v581_v62 = vsel %vm563_vm5, 0.7853982, %v929_v0 }
 0x1f5   : > { %841 = vrcp.f32 %v555_v31  ;;  %v582_v1 = vsel %vm560_vm4, 1.5707964, %v580_v57  ;;  %v583_v8 = vsel %vm561_vm6, 1.5707964, %v581_v62  ;;  %v559_v15 = vsel %vm557_vm8, -1.0, %v931_v12 }
 0x1f6   : > { %843 = vrcp.f32 %v571_v33 }
 0x1fc   : > { %v838_v34 = vpop.eup %837 }
 0x1fd   : > { %v565_v41 = vmul.f32 -1.0, %v838_v34 }
 0x1fe   : > { %v840_v36 = vpop.eup %839 }
 0x1ff   : > { %v842_v37 = vpop.eup %841  ;;  %v573_v38 = vmul.f32 %v840_v36, %v747_v35 }
 0x200   : > { %v844_v40 = vpop.eup %843  ;;  %v567_v45 = vmul.f32 -1.0, %v842_v37 }
 0x201   : > { %v576_v42 = vsel %vm562_vm3, %v573_v38, %v554_v30  ;;  %v575_v43 = vmul.f32 %v844_v40, %v748_v39 }
 0x202   : > { %v578_v44 = vsel %vm560_vm4, %v565_v41, %v576_v42 }
 0x203   : > { %v584_v46 = vmul.f32 %v578_v44, %v578_v44  ;;  %v577_v47 = vsel %vm563_vm5, %v575_v43, %v555_v31  ;;  %v598_v2 = vadd.f32 %v582_v1, %v578_v44  ;;  %v623_v31 = vrot.slane %v1111_v29, 2 }
 0x204   : > { %v579_v48 = vsel %vm561_vm6, %v567_v45, %v577_v47 }
 0x205   : > { %v586_v49 = vmul.f32 0.080537446, %v584_v46  ;;  %v585_v50 = vmul.f32 %v579_v48, %v579_v48  ;;  %v600_v61 = vmul.f32 %v584_v46, %v578_v44  ;;  %v599_v10 = vadd.f32 %v583_v8, %v579_v48 }
 0x207   : > { %v749_v51 = vadd.f32 -0.13877685, %v586_v49  ;;  %v587_v52 = vmul.f32 0.080537446, %v585_v50  ;;  %v601_v5 = vmul.f32 %v585_v50, %v579_v48 }
 0x209   : > { %v590_v53 = vmul.f32 %v749_v51, %v584_v46  ;;  %v750_v54 = vadd.f32 -0.13877685, %v587_v52 }
 0x20b   : > { %v592_v55 = vadd.f32 0.19977711, %v590_v53  ;;  %v591_v56 = vmul.f32 %v750_v54, %v585_v50 }
 0x20d   : > { %v594_v58 = vmul.f32 %v592_v55, %v584_v46  ;;  %v593_v59 = vadd.f32 0.19977711, %v591_v56 }
 0x20f   : > { %v751_v60 = vadd.f32 -0.3333295, %v594_v58  ;;  %v595_v63 = vmul.f32 %v593_v59, %v585_v50 }
 0x211   : > { %v602_v3 = vmul.f32 %v751_v60, %v600_v61  ;;  %v752_v4 = vadd.f32 -0.3333295, %v595_v63 }
 0x213   : > { %v604_v9 = vadd.f32 %v602_v3, %v598_v2  ;;  %v603_v11 = vmul.f32 %v752_v4, %v601_v5 }
 0x215   : > { %v606_v14 = vmul.f32 %v604_v9, %v558_v13  ;;  %v605_v0 = vadd.f32 %v603_v11, %v599_v10 }
 0x217   : > { %v608_v16 = vmul.f32 3.18, %v606_v14  ;;  %v607_v17 = vmul.f32 %v605_v0, %v559_v15 }
 0x219   : > { %v610_v18 = vmul.f32 1.442695, %v608_v16  ;;  %v609_v19 = vmul.f32 3.18, %v607_v17 }
 0x21b   : > { %845 = vpow2.f32 %v610_v18  ;;  %v612_v20 = vmul.f32 1.442695, %v609_v19 }
 0x21d   : > { %847 = vpow2.f32 %v612_v20 }
 0x225   : > { %v846_v23 = vpop.eup %845 }
 0x226   : > { %v618_v24 = vmul.f32 %v846_v23, %v614_v21 }
 0x227   : > { %v848_v26 = vpop.eup %847 }
 0x228   : > { %v626_v28 = vadd.f32 %v622_v25, %v618_v24  ;;  %v619_v30 = vmul.f32 %v848_v26, %v615_v22 }
 0x22a   : > { %v627_v32 = vadd.f32 %v623_v31, %v619_v30 }
 0x22c   : > { %v631_v33 = vcombine.low %v626_v28, %v627_v32 }
 0x22e   : > { %v632_v34 = vrot.slane %v631_v33, 6 }
 0x230   : > { %634 = vst [vmem:[%s1105_s27] sm:$0xcc] %v632_v34 }
 0x231   : > { %862 = shalt.err (!%p859_p5)
}
 0x232   : > { %s863_s15 = scalar_lea.hbm %s1136_s10, 128  ;;  %s867_s24 = scalar_lea.hbm %s1191_s5, 256 }
 0x233   : > { %p864_p6 = scmp.ne.s32.totalorder %s1136_s10, %s863_s15  ;;  %p868_p10 = scmp.lt.u32.totalorder %s1136_s10, %s1191_s5 }
 0x234   : > { %p869_p11 = scmp.lt.u32.totalorder %s867_s24, %s863_s15  ;;  %p871_p13 = scmp.lt.u32.totalorder %s863_s15, %s1136_s10 }
 0x235   : > { %p865_p7 = pnand %p864_p6, %p1003_p4 }
 0x236   : > { %p870_p12 = por %p869_p11, %p868_p10 }
 0x237   : > { %p866_p9 = pneg %p865_p7 }
 0x238   : > { %p872_p0 = por %p871_p13, %p870_p12 }
 0x23a   : > { %p873_p1 = pnand %p872_p0, %p866_p9 }
 0x23c   : > { %876 = shalt.err (!%p873_p1)
}
 0x23d   : > { %776 = dma.vmem_to_hbm [thread:$0]  (%p1003_p4), %s1138_s7, 128, %s1136_s10, %s636_s11  }
 0x23e PF: > { %p782_p2 = scmp.ge.s32.totalorder %s927_s23, 2  ;;  %s664_s29 = sand.u32 1, %s907_s18  }
 0x23f   : > { %s665_s8 = scalar_lea.sflag [#allocation3], %s664_s29 }
 0x240   : > { %p779_p3 = pnand %p782_p2, %p1010_p8 }
 0x242   : > { %902 = dma.done.wait (!%p779_p3), %s665_s8, 128  }
 0x243   : > { %904 = vsyncadd (!%p779_p3), %s665_s8, 4294967168  ;;  %s18_s23 = sadd.s32 1, %s927_s23   ;;  %s1194_s18 = smov %s911_s19 }
 0x244   : > { %p15_p5 = scmp.ge.s32.totalorder %s18_s23, 4   ;;  %s1195_s19 = smov %s915_s20 }
 0x245   : > { %s1196_s20 = smov %s1016_s6  ;;  %s1197_s21 = smov %s923_s22 }
 0x246   : > { %s1198_s22 = smov %s1200_s26  ;;  %17 = sbr.rel (!%p15_p5) target bundleno = 4 (0x4), region = 75 }
 0x24d   :  { %670 = vsyncpa [#allocation3], 1 }
 0x24e   :  { %672 = vsyncpa [#allocation3 + $0x1], 1 }

</bundles_post_ra>
